<compile_context>
chip_gen: v5e
topology: v5e:2x2
jax: 0.10.0
libtpu: 0.0.40
codegen_flags: <defaults>
</compile_context>

<pallas_src>
import functools

import jax
import jax.numpy as jnp
from jax import lax
from jax.experimental import pallas as pl
from jax.experimental.pallas import tpu as pltpu


_FALLBACK_VMEM_CAPACITY = 64 * 1024 * 1024   # conservative (v7x per-core VMEM)


def _tpu_vmem_capacity_bytes():
    """Physical VMEM capacity of the current chip generation (with fallback)."""
    try:
        info = pltpu.get_tpu_info()
        cap = getattr(info, "vmem_capacity_bytes", None)
        if cap:
            return int(cap)
    except Exception:
        pass
    return _FALLBACK_VMEM_CAPACITY


def _vmem_budgets():
    """(mosaic vmem_limit_bytes, fused-path working-set budget)."""
    cap = _tpu_vmem_capacity_bytes()
    # ~0.8x capacity for the Mosaic scoped-VMEM limit (never closer than 4 MiB
    # to physical); fused path keeps another 8 MiB of headroom below that.
    vmem_limit = max(min(int(cap * 0.8), cap - (4 << 20)), 16 << 20)
    fused_budget = max(vmem_limit - (8 << 20), 8 << 20)
    return vmem_limit, fused_budget


def _coeffs_from_stats(mu_c, m2_c, rho, gamma, beta, *, channel_axis, c, hw, eps):
    """Per-channel scale/shift from per-channel mean / centered-M2.

    Works both in-kernel on (1, C, 1) arrays (channel_axis=1) and in the
    wrapper on (B, C) arrays (channel_axis=1).  Returns (s, t) such that
    out = x * s + t == ILN(x).
    """
    # Instance-norm: unbiased variance (divide by HW - 1), matching torch.var.
    inv_in = lax.rsqrt(m2_c / (hw - 1) + eps)
    # Layer-norm stats from the per-channel stats (exact total-variance
    # identity; stays centered, no E[x^2]-mu^2 cancellation).
    ln_mean = jnp.mean(mu_c, axis=channel_axis, keepdims=True)
    d = mu_c - ln_mean
    ln_m2 = jnp.sum(m2_c + hw * (d * d), axis=channel_axis, keepdims=True)
    inv_ln = lax.rsqrt(ln_m2 / (c * hw - 1) + eps)

    w_in = rho * inv_in
    w_ln = (1.0 - rho) * inv_ln
    s = gamma * (w_in + w_ln)
    t = beta - gamma * (w_in * mu_c + w_ln * ln_mean)
    return s, t


def _iln_fused_kernel(x_ref, params_ref, o_ref, *, eps):
    """Whole-sample fused kernel: stats + single f32 FMA, one grid step per batch."""
    xf = x_ref[...].astype(jnp.float32)               # (1, C, HW) f32, reused below
    c = xf.shape[1]
    hw = xf.shape[2]

    mu_c = jnp.mean(xf, axis=2, keepdims=True)        # (1, C, 1)
    ctr = xf - mu_c
    m2_c = jnp.sum(ctr * ctr, axis=2, keepdims=True)  # centered sum of squares

    p = params_ref[...]                               # (3, C, 1) f32 [rho, gamma, beta]
    s, t = _coeffs_from_stats(mu_c, m2_c, p[0:1], p[1:2], p[2:3],
                              channel_axis=1, c=c, hw=hw, eps=eps)

    # Single FMA over the resident f32 copy; one cast to the output dtype.
    o_ref[...] = (xf * s + t).astype(o_ref.dtype)


def _iln_stats_kernel(x_ref, stats_ref, mean_acc, m2_acc, *, hw, thw, nps):
    """Tiled pass 1: per-(batch, split) accumulate per-channel (mean, M2) over
    HW tiles (tail columns masked), emit packed [mean, M2] once per split."""
    s = pl.program_id(1)
    h = pl.program_id(2)
    start = (s * nps + h) * thw                       # global column offset of this tile

    xf = x_ref[...].astype(jnp.float32)               # (1, C, thw)
    rem = hw - start                                  # valid columns left (may exceed thw)
    col = lax.broadcasted_iota(jnp.int32, xf.shape, 2)
    mask = col < rem
    cnt = jnp.minimum(rem, thw).astype(jnp.float32)   # valid columns in this tile

    xm = jnp.where(mask, xf, 0.0)
    mu_t = jnp.sum(xm, axis=2, keepdims=True) / cnt   # (1, C, 1)
    ctr = jnp.where(mask, xf - mu_t, 0.0)
    m2_t = jnp.sum(ctr * ctr, axis=2, keepdims=True)  # (1, C, 1)

    @pl.when(h == 0)
    def _():
        mean_acc[...] = mu_t
        m2_acc[...] = m2_t

    @pl.when(h > 0)
    def _():
        # Chan's exact (numerically stable) pairwise mean/M2 combination.
        # All previous tiles of this split are full (only the global last tile
        # is partial, and it is the local last tile of the last split).
        n_prev = (h * thw).astype(jnp.float32)
        n_new = n_prev + cnt
        delta = mu_t - mean_acc[...]
        mean_acc[...] = mean_acc[...] + delta * (cnt / n_new)
        m2_acc[...] = m2_acc[...] + m2_t + (delta * delta) * (n_prev * cnt / n_new)

    @pl.when(h == pl.num_programs(2) - 1)
    def _():
        st = jnp.concatenate([mean_acc[...], m2_acc[...]], axis=2)   # (1, C, 2)
        stats_ref[...] = st[None]                                    # (1, 1, C, 2)


def _iln_apply_kernel(x_ref, st_ref, o_ref):
    """Tiled pass 2: single per-channel f32 FMA over each (1, C, THW) tile."""
    xf = x_ref[...].astype(jnp.float32)
    st = st_ref[...]                                  # (1, C, 2) f32, [s, t]
    s = st[:, :, 0:1]
    t = st[:, :, 1:2]
    o_ref[...] = (xf * s + t).astype(o_ref.dtype)     # tail OOB columns are discarded


def _pick_tile_hw(c, hw, itemsize, target_bytes):
    """Pick a lane-tile size for the tiled path.

    Returns either hw itself (full-dim block, always legal) or a multiple of
    128 <= hw.  Non-128-divisible hw uses a cdiv grid with in-kernel masking.
    """
    if hw <= 256:
        return hw
    # x tile plus f32 temporaries dominate -> budget per lane at f32 width.
    bytes_per_lane = max(1, c) * max(itemsize, 4)
    max_lanes = max(128, (target_bytes // bytes_per_lane) // 128 * 128)
    if hw % 128 == 0:
        # Prefer an exact 128-multiple divisor (no tail masking at all).
        best = 128
        t = 128
        while t <= hw and t <= max_lanes:
            if hw % t == 0:
                best = t
            t += 128
        return best
    if c * hw * itemsize <= target_bytes:
        return hw                                    # whole row fits: full-dim block
    return max(128, min(max_lanes, (hw // 128) * 128))


def iln_pallas(x, rho, gamma, beta, eps=1e-5, force_tile_hw=None):
    """x: (B, C, H, W); rho, gamma, beta: (1, C, 1, 1) parameters."""
    B, C, H, W = x.shape
    HW = H * W
    itemsize = jnp.dtype(x.dtype).itemsize
    x3 = x.reshape(B, C, HW)

    vmem_limit, fused_budget = _vmem_budgets()

    x_bytes = C * HW * itemsize
    f32_bytes = C * HW * 4
    slack = 1 << 20
    est_double_buf = 4 * x_bytes + 2 * f32_bytes + slack   # 2x in + 2x out blocks + temps
    est_single_buf = 2 * x_bytes + 2 * f32_bytes + slack   # Buffered(1) in/out + temps

    if force_tile_hw is None and est_single_buf <= fused_budget:
        # ---------- fused single-pass path (1 HBM read + 1 HBM write) ----------
        # Pack the three (1, C, 1, 1) parameters into one small array -> one DMA
        # with a constant index map instead of three lane-width-1 tiles.
        params = jnp.concatenate(
            [rho.reshape(1, C, 1).astype(jnp.float32),
             gamma.reshape(1, C, 1).astype(jnp.float32),
             beta.reshape(1, C, 1).astype(jnp.float32)],
            axis=0)                                   # (3, C, 1)

        if est_double_buf <= fused_budget:
            x_spec = pl.BlockSpec((1, C, HW), lambda b: (b, 0, 0))
            o_spec = pl.BlockSpec((1, C, HW), lambda b: (b, 0, 0))
        else:
            # Trade cross-sample pipelining for staying on the 1R+1W path.
            x_spec = pl.BlockSpec((1, C, HW), lambda b: (b, 0, 0),
                                  pipeline_mode=pl.Buffered(1))
            o_spec = pl.BlockSpec((1, C, HW), lambda b: (b, 0, 0),
                                  pipeline_mode=pl.Buffered(1))

        out3 = pl.pallas_call(
            functools.partial(_iln_fused_kernel, eps=eps),
            out_shape=jax.ShapeDtypeStruct((B, C, HW), x.dtype),
            grid_spec=pltpu.PrefetchScalarGridSpec(
                num_scalar_prefetch=0,
                grid=(B,),
                in_specs=[x_spec,
                          pl.BlockSpec((3, C, 1), lambda b: (0, 0, 0))],
                out_specs=o_spec,
            ),
            compiler_params=pltpu.CompilerParams(
                dimension_semantics=("parallel",),
                vmem_limit_bytes=vmem_limit),
        )(x3, params)
        return out3.reshape(B, C, H, W)

    # ---------- tiled two-pass path ----------
    tile_target = max(2 << 20, min(8 << 20, vmem_limit // 12))
    if force_tile_hw is not None:
        thw = int(force_tile_hw)
    else:
        thw = _pick_tile_hw(C, HW, itemsize, tile_target)
    if thw >= HW:
        thw = HW
    elif thw % 128 != 0:
        thw = HW                                       # safety: full-dim block is always legal
    n_hw = (HW + thw - 1) // thw                       # cdiv; tail masked in-kernel

    # Megacore: with a single sample, split the HW reduction into 2 parallel
    # halves so both TensorCores (v7x) get work in pass 1.
    n_split = 2 if (B == 1 and n_hw >= 2 and n_hw % 2 == 0) else 1
    nps = n_hw // n_split

    stats = pl.pallas_call(
        functools.partial(_iln_stats_kernel, hw=HW, thw=thw, nps=nps),
        out_shape=jax.ShapeDtypeStruct((B, n_split, C, 2), jnp.float32),
        grid_spec=pltpu.PrefetchScalarGridSpec(
            num_scalar_prefetch=0,
            grid=(B, n_split, nps),
            in_specs=[pl.BlockSpec((1, C, thw),
                                   lambda b, s, h: (b, 0, s * nps + h))],
            out_specs=pl.BlockSpec((1, 1, C, 2), lambda b, s, h: (b, s, 0, 0)),
            scratch_shapes=[pltpu.VMEM((1, C, 1), jnp.float32),
                            pltpu.VMEM((1, C, 1), jnp.float32)],
        ),
        compiler_params=pltpu.CompilerParams(
            dimension_semantics=("parallel", "parallel", "arbitrary"),
            vmem_limit_bytes=vmem_limit),
    )(x3)

    # Tiny O(B*C) glue in plain JAX: combine split partials exactly (Chan) and
    # fold rho/gamma/beta into packed per-channel (s, t) coefficients.
    mean_s = stats[..., 0]                             # (B, n_split, C)
    m2_s = stats[..., 1]
    if n_split == 1:
        mu_c = mean_s[:, 0]                            # (B, C)
        m2_c = m2_s[:, 0]
    else:
        n0 = float(nps * thw)
        n1 = float(HW) - n0
        m0, m1 = mean_s[:, 0], mean_s[:, 1]
        M0, M1 = m2_s[:, 0], m2_s[:, 1]
        delta = m1 - m0
        mu_c = m0 + delta * (n1 / (n0 + n1))
        m2_c = M0 + M1 + delta * delta * (n0 * n1 / (n0 + n1))

    rho_c = rho.reshape(1, C).astype(jnp.float32)
    gamma_c = gamma.reshape(1, C).astype(jnp.float32)
    beta_c = beta.reshape(1, C).astype(jnp.float32)
    s_co, t_co = _coeffs_from_stats(mu_c, m2_c, rho_c, gamma_c, beta_c,
                                    channel_axis=1, c=C, hw=HW, eps=eps)
    st = jnp.stack([s_co, t_co], axis=-1)              # (B, C, 2) f32, one small DMA

    out3 = pl.pallas_call(
        _iln_apply_kernel,
        out_shape=jax.ShapeDtypeStruct((B, C, HW), x.dtype),
        grid_spec=pltpu.PrefetchScalarGridSpec(
            num_scalar_prefetch=0,
            grid=(B, n_hw),
            in_specs=[pl.BlockSpec((1, C, thw), lambda b, h: (b, 0, h)),
                      pl.BlockSpec((1, C, 2), lambda b, h: (b, 0, 0))],
            out_specs=pl.BlockSpec((1, C, thw), lambda b, h: (b, 0, h)),
        ),
        compiler_params=pltpu.CompilerParams(
            dimension_semantics=("parallel", "parallel"),
            vmem_limit_bytes=vmem_limit),
    )(x3, st)
    return out3.reshape(B, C, H, W)


def iln_ref(x, rho, gamma, beta, eps=1e-5):
    """Pure-JAX reference matching the PyTorch ILN forward (unbiased variance)."""
    x = x.astype(jnp.float32)
    in_mean = jnp.mean(x, axis=(2, 3), keepdims=True)
    in_var = jnp.var(x, axis=(2, 3), keepdims=True, ddof=1)
    out_in = (x - in_mean) / jnp.sqrt(in_var + eps)
    ln_mean = jnp.mean(x, axis=(1, 2, 3), keepdims=True)
    ln_var = jnp.var(x, axis=(1, 2, 3), keepdims=True, ddof=1)
    out_ln = (x - ln_mean) / jnp.sqrt(ln_var + eps)
    out = rho * out_in + (1.0 - rho) * out_ln
    return out * gamma + beta


if __name__ == "__main__":
    B, C, H, W = 2, 4, 16, 16
    key = jax.random.PRNGKey(0)
    kx, kr, kg, kb, kx2 = jax.random.split(key, 5)

    x = jax.random.normal(kx, (B, C, H, W), dtype=jnp.float32)
    rho = jax.random.uniform(kr, (1, C, 1, 1), dtype=jnp.float32)
    gamma = jax.random.normal(kg, (1, C, 1, 1), dtype=jnp.float32)
    beta = jax.random.normal(kb, (1, C, 1, 1), dtype=jnp.float32)

    ref = iln_ref(x, rho, gamma, beta)

    # Fused single-pass path.
    out_fused = jax.block_until_ready(iln_pallas(x, rho, gamma, beta))
    assert out_fused.shape == (B, C, H, W)
    assert jnp.allclose(out_fused, ref, atol=1e-4, rtol=1e-4)

    # Tiled two-pass path (forced small tile; HW divisible by tile, no masking).
    out_tiled = jax.block_until_ready(iln_pallas(x, rho, gamma, beta, force_tile_hw=128))
    assert jnp.allclose(out_tiled, ref, atol=1e-4, rtol=1e-4)

    # Tiled path with non-128-divisible HW (tail masking) and B=1 (HW split
    # into 2 parallel halves for megacore).
    x2 = jax.random.normal(kx2, (1, C, 20, 20), dtype=jnp.float32)
    ref2 = iln_ref(x2, rho, gamma, beta)
    out_tail = jax.block_until_ready(iln_pallas(x2, rho, gamma, beta, force_tile_hw=128))
    assert jnp.allclose(out_tail, ref2, atol=1e-4, rtol=1e-4)

    # Module-default parameter init: rho=0, gamma=1, beta=0.
    rho0 = jnp.zeros((1, C, 1, 1), jnp.float32)
    gamma1 = jnp.ones((1, C, 1, 1), jnp.float32)
    beta0 = jnp.zeros((1, C, 1, 1), jnp.float32)
    out_def = jax.block_until_ready(iln_pallas(x, rho0, gamma1, beta0))
    assert jnp.allclose(out_def, iln_ref(x, rho0, gamma1, beta0), atol=1e-4, rtol=1e-4)

    print("KERNEL_OK")
</pallas_src>

<mosaic_0001>
module attributes {stable_mosaic.version = 11 : i64} {
  func.func @_iln_fused_kernel(%arg0: i32, %arg1: memref<1x4x256xf32, #tpu.memory_space<vmem>>, %arg2: memref<3x4x1xf32, #tpu.memory_space<vmem>>, %arg3: memref<1x4x256xf32, #tpu.memory_space<vmem>>) attributes {dimension_semantics = [#tpu.dimension_semantics<parallel>], iteration_bounds = array<i64: 2>, scalar_prefetch = 0 : i64, scratch_operands = 0 : i64, tpu.core_type = #tpu.core_type<tc>, window_params = [{transform_indices = @transform_0, window_bounds = array<i64: 1, 4, 256>}, {pipeline_mode = #tpu.pipeline_mode<synchronous>, transform_indices = @transform_1, window_bounds = array<i64: 3, 4, 1>}, {transform_indices = @transform_2, window_bounds = array<i64: 1, 4, 256>}]} {
    %c0 = arith.constant 0 : index
    %c0_0 = arith.constant 0 : index
    %c0_1 = arith.constant 0 : index
    %0 = vector.load %arg1[%c0, %c0_0, %c0_1] : memref<1x4x256xf32, #tpu.memory_space<vmem>>, vector<1x4x256xf32>
    %cst = arith.constant dense<0.000000e+00> : vector<1x4xf32>
    %1 = vector.multi_reduction <add>, %0, %cst [2] : vector<1x4x256xf32> to vector<1x4xf32>
    %2 = vector.shape_cast %1 : vector<1x4xf32> to vector<1x4x1xf32>
    %cst_2 = arith.constant 2.560000e+02 : f32
    %3 = vector.broadcast %cst_2 : f32 to vector<1x4x1xf32>
    %4 = arith.divf %2, %3 : vector<1x4x1xf32>
    %5 = vector.broadcast %4 : vector<1x4x1xf32> to vector<1x4x256xf32>
    %6 = arith.subf %0, %5 : vector<1x4x256xf32>
    %7 = arith.mulf %6, %6 : vector<1x4x256xf32>
    %cst_3 = arith.constant dense<0.000000e+00> : vector<1x4xf32>
    %8 = vector.multi_reduction <add>, %7, %cst_3 [2] : vector<1x4x256xf32> to vector<1x4xf32>
    %9 = vector.shape_cast %8 : vector<1x4xf32> to vector<1x4x1xf32>
    %c0_4 = arith.constant 0 : index
    %c0_5 = arith.constant 0 : index
    %c0_6 = arith.constant 0 : index
    %10 = vector.load %arg2[%c0_4, %c0_5, %c0_6] : memref<3x4x1xf32, #tpu.memory_space<vmem>>, vector<3x4x1xf32>
    %11 = vector.extract_strided_slice %10 {offsets = [0, 0, 0], sizes = [1, 4, 1], strides = [1, 1, 1]} : vector<3x4x1xf32> to vector<1x4x1xf32>
    %12 = vector.extract_strided_slice %10 {offsets = [1, 0, 0], sizes = [1, 4, 1], strides = [1, 1, 1]} : vector<3x4x1xf32> to vector<1x4x1xf32>
    %13 = vector.extract_strided_slice %10 {offsets = [2, 0, 0], sizes = [1, 4, 1], strides = [1, 1, 1]} : vector<3x4x1xf32> to vector<1x4x1xf32>
    %cst_7 = arith.constant 2.550000e+02 : f32
    %14 = vector.broadcast %cst_7 : f32 to vector<1x4x1xf32>
    %15 = arith.divf %9, %14 : vector<1x4x1xf32>
    %cst_8 = arith.constant 9.99999974E-6 : f32
    %16 = vector.broadcast %cst_8 : f32 to vector<1x4x1xf32>
    %17 = arith.addf %15, %16 : vector<1x4x1xf32>
    %18 = math.rsqrt %17 : vector<1x4x1xf32>
    %cst_9 = arith.constant dense<0.000000e+00> : vector<1x1xf32>
    %19 = vector.multi_reduction <add>, %4, %cst_9 [1] : vector<1x4x1xf32> to vector<1x1xf32>
    %20 = vector.shape_cast %19 : vector<1x1xf32> to vector<1x1x1xf32>
    %cst_10 = arith.constant 4.000000e+00 : f32
    %21 = vector.broadcast %cst_10 : f32 to vector<1x1x1xf32>
    %22 = arith.divf %20, %21 : vector<1x1x1xf32>
    %23 = vector.broadcast %22 : vector<1x1x1xf32> to vector<1x4x1xf32>
    %24 = arith.subf %4, %23 : vector<1x4x1xf32>
    %25 = arith.mulf %24, %24 : vector<1x4x1xf32>
    %cst_11 = arith.constant 2.560000e+02 : f32
    %26 = vector.broadcast %cst_11 : f32 to vector<1x4x1xf32>
    %27 = arith.mulf %26, %25 : vector<1x4x1xf32>
    %28 = arith.addf %9, %27 : vector<1x4x1xf32>
    %cst_12 = arith.constant dense<0.000000e+00> : vector<1x1xf32>
    %29 = vector.multi_reduction <add>, %28, %cst_12 [1] : vector<1x4x1xf32> to vector<1x1xf32>
    %30 = vector.shape_cast %29 : vector<1x1xf32> to vector<1x1x1xf32>
    %cst_13 = arith.constant 1.023000e+03 : f32
    %31 = vector.broadcast %cst_13 : f32 to vector<1x1x1xf32>
    %32 = arith.divf %30, %31 : vector<1x1x1xf32>
    %cst_14 = arith.constant 9.99999974E-6 : f32
    %33 = vector.broadcast %cst_14 : f32 to vector<1x1x1xf32>
    %34 = arith.addf %32, %33 : vector<1x1x1xf32>
    %35 = math.rsqrt %34 : vector<1x1x1xf32>
    %36 = arith.mulf %11, %18 : vector<1x4x1xf32>
    %cst_15 = arith.constant 1.000000e+00 : f32
    %37 = vector.broadcast %cst_15 : f32 to vector<1x4x1xf32>
    %38 = arith.subf %37, %11 : vector<1x4x1xf32>
    %39 = vector.broadcast %35 : vector<1x1x1xf32> to vector<1x4x1xf32>
    %40 = arith.mulf %38, %39 : vector<1x4x1xf32>
    %41 = arith.addf %36, %40 : vector<1x4x1xf32>
    %42 = arith.mulf %12, %41 : vector<1x4x1xf32>
    %43 = arith.mulf %36, %4 : vector<1x4x1xf32>
    %44 = vector.broadcast %22 : vector<1x1x1xf32> to vector<1x4x1xf32>
    %45 = arith.mulf %40, %44 : vector<1x4x1xf32>
    %46 = arith.addf %43, %45 : vector<1x4x1xf32>
    %47 = arith.mulf %12, %46 : vector<1x4x1xf32>
    %48 = arith.subf %13, %47 : vector<1x4x1xf32>
    %49 = vector.broadcast %42 : vector<1x4x1xf32> to vector<1x4x256xf32>
    %50 = arith.mulf %0, %49 : vector<1x4x256xf32>
    %51 = vector.broadcast %48 : vector<1x4x1xf32> to vector<1x4x256xf32>
    %52 = arith.addf %50, %51 : vector<1x4x256xf32>
    %c0_16 = arith.constant 0 : index
    %c0_17 = arith.constant 0 : index
    %c0_18 = arith.constant 0 : index
    %53 = vector.load %arg3[%c0_16, %c0_17, %c0_18] : memref<1x4x256xf32, #tpu.memory_space<vmem>>, vector<1x4x256xf32>
    tpu.vector_store %arg3[%c0_16, %c0_17, %c0_18], %52 {strides = array<i32>} : memref<1x4x256xf32, #tpu.memory_space<vmem>>, vector<1x4x256xf32>,
    return
  }
  func.func @transform_0(%arg0: i32) -> (i32, i32, i32) {
    %c0_i32 = arith.constant 0 : i32
    %c0_i32_0 = arith.constant 0 : i32
    %c0_i32_1 = arith.constant 0 : i32
    return %arg0, %c0_i32, %c0_i32_0 : i32, i32, i32
  }
  func.func @transform_1(%arg0: i32) -> (i32, i32, i32) {
    %c0_i32 = arith.constant 0 : i32
    %c0_i32_0 = arith.constant 0 : i32
    %c0_i32_1 = arith.constant 0 : i32
    %c0_i32_2 = arith.constant 0 : i32
    return %c0_i32, %c0_i32_0, %c0_i32_1 : i32, i32, i32
  }
  func.func @transform_2(%arg0: i32) -> (i32, i32, i32) {
    %c0_i32 = arith.constant 0 : i32
    %c0_i32_0 = arith.constant 0 : i32
    %c0_i32_1 = arith.constant 0 : i32
    return %arg0, %c0_i32, %c0_i32_0 : i32, i32, i32
  }
}

</mosaic_0001>

<bundles_post_ra>
// kernel: tpu_custom_call.1
= control target key start
LH: loop header
LB: loop body
LE: loop exit
PB: predicated region body
PF: predicated region fallthrough
CT: control target
= control target key end

     0   :  { %7 = vsyncpa [#allocation3], 0  ;;  %s750_s0 = inlined_call_operand.hbm [shape: f32[2,4,256], index: 0, kind: input, shape index: {}]   ;;  %s751_s1 = inlined_call_operand.vmem [shape: f32[3,4,1], index: 1, kind: input, shape index: {}]   ;;  %s752_s2 = inlined_call_operand.hbm [shape: f32[2,4,256], index: 2, kind: output, shape index: {}]  }
   0x1   :  { %9 = vsyncpa [#allocation3 + $0x1], 0 }
   0x2   :  { %10 = vsyncpa [#allocation4], 0 }
   0x3   :  { %12 = vsyncpa [#allocation4 + $0x1], 0  ;;  %s588_s9 = smov 0   ;;  %s590_s10 = smov 0  }
   0x4   :  { %s592_s11 = smov 0   ;;  %s594_s12 = smov 0  }
   0x5 LB: > { %s609_s13 = sadd.s32 4294967295, %s565_s12   ;;  %s387_s14 = sadd.s32 4294967294, %s565_s12   ;;  %s565_s12 = sphi %s594_s12, %s762_s12   ;;  %s561_s11 = sphi %s592_s11, %s761_s11   ;;  %s557_s10 = sphi %s590_s10, %s760_s10   ;;  %s553_s9 = sphi %s588_s9, %s759_s9  }
   0x6   : > { %s613_s15 = sadd.s32 1, %s565_s12   ;;  %s25_s16 = sadd.s32 1, %s561_s11 }
   0x7   : > { %s22_s17 = ssub.s32 %s565_s12, %s613_s15  ;;  %p32_p0 = scmp.ne.s32.totalorder %s561_s11, %s557_s10 }
   0x8   : > { %p23_p1 = scmp.eq.s32.totalorder %s22_s17, 0  ;;  %p33_p2 = scmp.eq.s32.totalorder %s565_s12, 0 }
   0x9   : > { %p38_p3 = scmp.ne.s32.totalorder %s557_s10, %s553_s9  ;;  %p39_p4 = scmp.eq.s32.totalorder %s609_s13, 0 }
   0xa   : > { %s625_s18 = scalar_select %p23_p1, %s561_s11, %s25_s16  }
   0xb   : > { %p627_p5 = por %p33_p2, %p32_p0  ;;  %p631_p6 = por %p39_p4, %p38_p3 }
   0xc   : > { %p83_p7 = scmp.eq.s32.totalorder %s609_s13, 1  ;;  %p89_p8 = scmp.eq.s32.totalorder %s387_s14, 1 }
   0xd   : > { %p415_p10 = scmp.lt.s32.totalorder %s565_s12, 2  ;;  %s112_s23 = sand.u32 1, %s561_s11  }
   0xe   : > { %p638_p11 = por %p83_p7, %p32_p0  ;;  %p642_p12 = por %p89_p8, %p38_p3 }
   0xf   : > { %s401_s24 = sshll.u32 %s565_s12, 3  ;;  %s390_s25 = sshll.u32 %s112_s23, 3 }
  0x10   : > { %s121_s28 = scalar_lea.hbm %s750_s0, %s401_s24  ;;  %s116_s30 = scalar_lea.vmem [#allocation2], %s390_s25 }
  0x11   : > { %s123_s29 = sshll.u32 %s121_s28, 4  ;;  %s125_s3 = sshll.u32 %s116_s30, 4  ;;  %s124_s29 = int_to_ptr.hbm [resolvable:$true] %s123_s29  ;;  %s126_s3 = int_to_ptr.vmem [resolvable:$true] %s125_s3 }
  0x12   : > { %p653_p13 = pnand %p415_p10, %p627_p5  ;;  %p393_p0 = scmp.ge.s32.totalorder %s565_s12, 1 }
  0x13   : > { %p130_p1 = scmp.lt.s32.totalorder %s565_s12, 3  ;;  %s113_s5 = scalar_lea.sflag [#allocation3], %s112_s23 }
  0x14   : > { %s469_s6 = sshra.s32 %s124_s29, 4  ;;  %p473_p3 = pneg %p653_p13  ;;  %s470_s6 = int_to_ptr.hbm [resolvable:$true] %s469_s6 }
  0x15   : > { %s471_s7 = scalar_lea.hbm %s470_s6, 8  ;;  %s476_s16 = scalar_lea.hbm %s750_s0, 16 }
  0x16   : > { %p472_p2 = scmp.ne.s32.totalorder %s470_s6, %s471_s7  ;;  %p477_p5 = scmp.lt.s32.totalorder %s470_s6, %s750_s0 }
  0x17   : > { %p478_p8 = scmp.lt.s32.totalorder %s476_s16, %s471_s7 }
  0x18   : > { %p474_p4 = pnand %p473_p3, %p472_p2 }
  0x19   : > { %p479_p10 = por %p478_p8, %p477_p5 }
  0x1a   : > { %p475_p7 = pneg %p474_p4 }
  0x1c   : > { %p480_p9 = pnand %p479_p10, %p475_p7 }
  0x1e   : > { %483 = shalt.err (!%p480_p9)
}
  0x1f   : > { %410 = dma.hbm_to_vmem [thread:$0]  (!%p653_p13), %s124_s29, 128, %s126_s3, %s113_s5  }
  0x20   : > { %p131_p2 = pnand %p393_p0, %p130_p1 }
  0x21   : > { %s674_s23 = sand.u32 (!%p131_p2), 1, %s557_s10  }
  0x22   : > { %134 = sbr.rel (%p131_p2) target bundleno = 476 (0x1dc), region = 28  ;;  %s394_s24 = sshll.u32 (!%p131_p2), %s674_s23, 3 }
  0x23   : > { %s137_s25 = scalar_lea.sflag (!%p131_p2), [#allocation3], %s674_s23  ;;  %s140_s26 = scalar_lea.vmem (!%p131_p2), [#allocation2], %s394_s24 }
  0x27   : > { %544 = dma.done.wait (%p631_p6), %s137_s25, 128  }
  0x28   : > { %546 = vsyncadd (%p631_p6), %s137_s25, 4294967168  ;;  %v684_v0 = vld [vmem:[%s140_s26] sm:$0xff]  ;;  %vm169_vm0 = vcmask 1043456   ;;  %v567_v6 = vmov 256.0   ;;  %v568_v12 = vmov 839922192  }
  0x29   : > { %164 = vst [vmem:[#allocation1] ss:$2 sm:$0xff] %v684_v0  ;;  %457 = vrcp.f32 %v567_v6  ;;  %v185_v13 = vunpack.c.l.s4 %v568_v12  ;;  %v569_v26 = vmov 4.0   ;;  %v570_v34 = vmov 255.0   ;;  %s402_s4 = sshll.u32 %s609_s13, 3  ;;  %s161_s8 = scalar_lea.vmem [#allocation5], %s394_s24 }
  0x2a   : > { %459 = vrcp.f32 %v569_v26  ;;  %v571_v45 = vmov 1023.0   ;;  %v572_v51 = vmov 0   ;;  %s312_s7 = scalar_lea.hbm %s752_s2, %s402_s4  ;;  %s314_s14 = sshll.u32 %s161_s8, 4  ;;  %s315_s14 = int_to_ptr.vmem [resolvable:$true] %s314_s14 }
  0x2b   : > { %v689_v15 = vunpack.c.0.s8 %v185_v13  ;;  %461 = vrcp.f32 %v570_v34  ;;  %455 = vset.pattern.permute.xlu1 %v572_v51  ;;  %456 = vset.pattern.permute.xlu0 %v572_v51  ;;  %s316_s16 = sshll.u32 %s312_s7, 4  ;;  %s301_s13 = scalar_lea.sflag [#allocation4], %s674_s23  ;;  %s317_s16 = int_to_ptr.hbm [resolvable:$true] %s316_s16 }
  0x2c   : > { %463 = vrcp.f32 %v571_v45  ;;  %s513_s17 = sshra.s32 %s317_s16, 4  ;;  %s519_s26 = scalar_lea.hbm %s752_s2, 16  ;;  %s514_s17 = int_to_ptr.hbm [resolvable:$true] %s513_s17 }
  0x2d   : > { %s515_s19 = scalar_lea.hbm %s514_s17, 8  ;;  %p520_p0 = scmp.lt.s32.totalorder %s514_s17, %s752_s2 }
  0x2e   : > { %p516_p6 = scmp.ne.s32.totalorder %s514_s17, %s515_s19  ;;  %p521_p1 = scmp.lt.s32.totalorder %s519_s26, %s515_s19 }
  0x2f   : > { %v458_v7 = vpop.eup %457 }
  0x30   : > { %v165_v1 = vld.sshfl [vmem:[#allocation1] sm:$0xff pattern:$0x75316420]  ;;  %v166_v2 = vld.sshfl [vmem:[#allocation1 + $0x8] sm:$0xff pattern:$0x75316420]  ;;  %vm180_vm1 = vweird.f32 %v458_v7  ;;  %v460_v29 = vpop.eup %459  ;;  %p517_p9 = pnand %p516_p6, %p638_p11  ;;  %p522_p3 = por %p521_p1, %p520_p0 }
  0x31   : > { %v170_v3 = vsel %vm169_vm0, %v165_v1, 0.0  ;;  %v171_v4 = vsel %vm169_vm0, %v166_v2, 0.0  ;;  %v176_v8 = vmul.f32 256.0, %v458_v7  ;;  %v232_v31 = vmul.f32 4.0, %v460_v29  ;;  %v462_v37 = vpop.eup %461 }
  0x32   : > { %v172_v5 = vadd.f32 %v171_v4, %v170_v3  ;;  %vm236_vm2 = vweird.f32 %v460_v29  ;;  %v206_v40 = vmul.f32 255.0, %v462_v37  ;;  %v464_v48 = vpop.eup %463  ;;  %vm210_vm3 = vweird.f32 %v462_v37  ;;  %p518_p13 = pneg %p517_p9 }
  0x33   : > { %v177_v9 = vsub.f32 1.0, %v176_v8  ;;  %v233_v33 = vsub.f32 1.0, %v232_v31  ;;  %v251_v52 = vmul.f32 1023.0, %v464_v48  ;;  %vm255_vm4 = vweird.f32 %v464_v48 }
  0x34   : > { %173 = vadd.xlane.f32.xlu0 %v172_v5  ;;  %v207_v43 = vsub.f32 1.0, %v206_v40  ;;  %p523_p4 = pnand %p522_p3, %p518_p13 }
  0x35   : > { %v178_v10 = vmul.f32 %v458_v7, %v177_v9  ;;  %v234_v36 = vmul.f32 %v460_v29, %v233_v33  ;;  %v252_v56 = vsub.f32 1.0, %v251_v52 }
  0x36   : > { %v208_v46 = vmul.f32 %v462_v37, %v207_v43 }
  0x37   : > { %v179_v11 = vadd.f32 %v458_v7, %v178_v10  ;;  %v235_v39 = vadd.f32 %v460_v29, %v234_v36  ;;  %v253_v62 = vmul.f32 %v464_v48, %v252_v56  ;;  %v204_v36 = vld [vmem:[%s751_s1 + $0x8] sm:$0xf] }
  0x38   : > { %v209_v49 = vadd.f32 %v462_v37, %v208_v46 }
  0x39   : > { %v181_v14 = vsel %vm180_vm1, %v458_v7, %v179_v11  ;;  %v237_v42 = vsel %vm236_vm2, %v460_v29, %v235_v39  ;;  %v254_v2 = vadd.f32 %v464_v48, %v253_v62  ;;  %v203_v29 = vld [vmem:[%s751_s1 + $0x4] sm:$0xf] }
  0x3a   : > { %v211_v53 = vsel %vm210_vm3, %v462_v37, %v209_v49 }
  0x3b   : > { %v256_v6 = vsel %vm255_vm4, %v464_v48, %v254_v2 }
  0xa7   : > { %v174_v16 = vpop.xlane.xlu0 %173 }
  0xa8   : > { %v691_v17 = vmul.f32 %v181_v14, %v174_v16 }
  0xaa   : > { %v187_v18 = vperm.slane %v691_v17, %v689_v15  ;;  %v224_v27 = vsel %vm169_vm0, %v691_v17, 0.0 }
  0xab   : > { %v225_v28 = vrot.slane %v224_v27, 4 }
  0xac   : > { %v189_v19 = vsub.f32 %v684_v0, %v187_v18 }
  0xad   : > { %v226_v30 = vadd.f32 %v225_v28, %v224_v27 }
  0xae   : > { %v190_v20 = vmul.f32 %v189_v19, %v189_v19 }
  0xaf   : > { %v227_v32 = vrot.slane %v226_v30, 2 }
  0xb0   : > { %192 = vst [vmem:[#allocation1] ss:$2 sm:$0xff] %v190_v20 }
  0xb1   : > { %v228_v35 = vadd.f32 %v227_v32, %v226_v30 }
  0xb3   : > { %v229_v38 = vrot.slane %v228_v35, 1 }
  0xb5   : > { %v230_v41 = vadd.f32 %v229_v38, %v228_v35 }
  0xb7   : > { %v193_v21 = vld.sshfl [vmem:[#allocation1] sm:$0xff pattern:$0x75316420]  ;;  %v194_v22 = vld.sshfl [vmem:[#allocation1 + $0x8] sm:$0xff pattern:$0x75316420]  ;;  %v238_v44 = vmul.f32 %v237_v42, %v230_v41 }
  0xb8   : > { %v197_v23 = vsel %vm169_vm0, %v193_v21, 0.0  ;;  %v198_v24 = vsel %vm169_vm0, %v194_v22, 0.0  ;;  %v202_v21 = vld [vmem:[%s751_s1] sm:$0xf] }
  0xb9   : > { %v199_v25 = vadd.f32 %v198_v24, %v197_v23  ;;  %v239_v47 = vsub.f32 %v691_v17, %v238_v44  ;;  %v270_v24 = vsub.f32 1.0, %v202_v21 }
  0xbb   : > { %200 = vadd.xlane.f32.xlu0 %v199_v25  ;;  %v240_v50 = vmul.f32 %v239_v47, %v239_v47 }
  0xbd   : > { %v241_v54 = vmul.f32 256.0, %v240_v50 }
 0x12e   : > { %v201_v55 = vpop.xlane.xlu0 %200 }
 0x12f   : > { %v212_v57 = vmul.f32 %v211_v53, %v201_v55  ;;  %v242_v58 = vadd.f32 %v241_v54, %v201_v55 }
 0x131   : > { %v213_v59 = vadd.f32 1e-05, %v212_v57  ;;  %v243_v60 = vsel %vm169_vm0, %v242_v58, 0.0 }
 0x132   : > { %v244_v61 = vrot.slane %v243_v60, 4 }
 0x133   : > { %465 = vrsqrt.f32 %v213_v59  ;;  %vm220_vm6 = vweird.f32 %v213_v59 }
 0x134   : > { %v245_v63 = vadd.f32 %v244_v61, %v243_v60 }
 0x136   : > { %v246_v1 = vrot.slane %v245_v63, 2 }
 0x138   : > { %v247_v3 = vadd.f32 %v246_v1, %v245_v63 }
 0x139   : > { %v466_v4 = vpop.eup %465 }
 0x13a   : > { %v248_v5 = vrot.slane %v247_v3, 1  ;;  %v215_v7 = vmul.f32 %v466_v4, %v213_v59  ;;  %vm221_vm5 = vweird.f32 %v466_v4 }
 0x13b   : > { %vm222_vm7 = vmor %vm220_vm6, %vm221_vm5 }
 0x13c   : > { %v249_v8 = vadd.f32 %v248_v5, %v247_v3  ;;  %v216_v10 = vmul.f32 %v466_v4, %v215_v7 }
 0x13e   : > { %v257_v9 = vmul.f32 %v256_v6, %v249_v8  ;;  %v217_v12 = vmul.f32 0.5, %v216_v10 }
 0x140   : > { %v258_v11 = vadd.f32 1e-05, %v257_v9  ;;  %v218_v13 = vsub.f32 1.5, %v217_v12 }
 0x142   : > { %467 = vrsqrt.f32 %v258_v11  ;;  %v219_v18 = vmul.f32 %v466_v4, %v218_v13  ;;  %vm265_vm9 = vweird.f32 %v258_v11 }
 0x144   : > { %v223_v22 = vsel %vm222_vm7, %v466_v4, %v219_v18 }
 0x145   : > { %v269_v26 = vmul.f32 %v223_v22, %v202_v21 }
 0x147   : > { %v274_v31 = vmul.f32 %v269_v26, %v691_v17 }
 0x148   : > { %v468_v14 = vpop.eup %467 }
 0x149   : > { %v260_v16 = vmul.f32 %v468_v14, %v258_v11  ;;  %vm266_vm8 = vweird.f32 %v468_v14 }
 0x14a   : > { %vm267_vm10 = vmor %vm265_vm9, %vm266_vm8 }
 0x14b   : > { %v261_v19 = vmul.f32 %v468_v14, %v260_v16 }
 0x14d   : > { %v262_v20 = vmul.f32 0.5, %v261_v19 }
 0x14f   : > { %v263_v23 = vsub.f32 1.5, %v262_v20 }
 0x151   : > { %v264_v25 = vmul.f32 %v468_v14, %v263_v23 }
 0x153   : > { %v268_v27 = vsel %vm267_vm10, %v468_v14, %v264_v25 }
 0x154   : > { %v271_v28 = vmul.f32 %v270_v24, %v268_v27 }
 0x156   : > { %v272_v30 = vadd.f32 %v271_v28, %v269_v26  ;;  %v275_v32 = vmul.f32 %v271_v28, %v238_v44 }
 0x158   : > { %v273_v33 = vmul.f32 %v272_v30, %v203_v29  ;;  %v276_v34 = vadd.f32 %v275_v32, %v274_v31 }
 0x15a   : > { %281 = vperm.xlu1 %455, %v273_v33   ;;  %v277_v35 = vmul.f32 %v276_v34, %v203_v29 }
 0x15c   : > { %v278_v37 = vsub.f32 %v204_v36, %v277_v35 }
 0x162   : > { %291 = vperm.xlu1 %455, %v278_v37  }
 0x1cc   : > { %v282_v38 = vpop.permute.xlu1 %281 }
 0x1cd   : > { %v286_v39 = vperm.slane %v282_v38, %v689_v15 }
 0x1cf   : > { %v288_v40 = vmul.f32 %v286_v39, %v684_v0 }
 0x1d4   : > { %v292_v17 = vpop.permute.xlu1 %291 }
 0x1d5   : > { %v296_v41 = vperm.slane %v292_v17, %v689_v15 }
 0x1d7   : > { %v298_v42 = vadd.f32 %v296_v41, %v288_v40 }
 0x1d9   : > { %299 = vst [vmem:[%s161_s8] sm:$0xff] %v298_v42 }
 0x1da   : > { %526 = shalt.err (!%p523_p4)
}
 0x1db   : > { %405 = dma.vmem_to_hbm [thread:$0]  (%p638_p11), %s315_s14, 128, %s317_s16, %s301_s13  }
 0x1dc PF: > { %s328_s23 = sand.u32 1, %s553_s9   ;;  %p758_p7 = scmp.ge.s32.totalorder %s565_s12, 2 }
 0x1dd   : > { %s329_s28 = scalar_lea.sflag [#allocation4], %s328_s23 }
 0x1de   : > { %p412_p5 = pnand %p758_p7, %p642_p12 }
 0x1e0   : > { %p413_p8 = pneg %p412_p5 }
 0x1e2   : > { %548 = dma.done.wait (%p413_p8), %s329_s28, 128  }
 0x1e3   : > { %550 = vsyncadd (%p413_p8), %s329_s28, 4294967168  ;;  %p15_p10 = scmp.ge.s32.totalorder %s613_s15, 4   ;;  %s759_s9 = smov %s557_s10 }
 0x1e4   : > { %s760_s10 = smov %s561_s11  ;;  %s761_s11 = smov %s625_s18 }
 0x1e5   : > { %s762_s12 = smov %s613_s15  ;;  %17 = sbr.rel (!%p15_p10) target bundleno = 5 (0x5), region = 73 }
 0x1ea   :  { %335 = vsyncpa [#allocation3], 1 }
 0x1eb   :  { %337 = vsyncpa [#allocation3 + $0x1], 1 }
 0x1ec   :  { %338 = vsyncpa [#allocation4], 1 }
 0x1ed   :  { %340 = vsyncpa [#allocation4 + $0x1], 1 }

</bundles_post_ra>
